<compile_context>
chip_gen: v7x
topology: tpu7x:2x2x1
jax: 0.10.0
libtpu: 0.0.40
codegen_flags: <defaults>
</compile_context>

<pallas_src>
import math

import jax
import jax.numpy as jnp
from jax.experimental import pallas as pl
from jax.experimental.pallas import tpu as pltpu


def _round_up(x, m):
    return ((x + m - 1) // m) * m


def bpnn_kernel(x_ref, w1_ref, b1_ref, w2_ref, b2_ref, o_ref):
    # hidden = relu(x @ W1 + b1): bf16 MXU matmul, f32 accumulate + epilogue.
    h = jnp.dot(x_ref[...], w1_ref[...], preferred_element_type=jnp.float32)
    h = jnp.maximum(h + b1_ref[...], 0.0)
    # out = hidden @ W2 + b2 (hidden re-cast to bf16 for the MXU, f32 acc).
    o = jnp.dot(h.astype(w2_ref.dtype), w2_ref[...],
                preferred_element_type=jnp.float32)
    o_ref[...] = (o + b2_ref[...]).astype(o_ref.dtype)


def _vmem_ceiling_bytes():
    # Generation-aware scoped-VMEM ceiling: ~half of physical VMEM.
    # v7x: 64 MiB phys -> 32 MiB ceiling; v5e/v6e: 128 MiB -> 64 MiB.
    try:
        cap = pltpu.get_tpu_info().vmem_capacity_bytes
    except Exception:
        cap = 64 * 1024 * 1024
    return max(cap // 2, 32 * 1024 * 1024)


def _pick_batch_tile(B, max_batch_tile):
    # Balanced tiles: choose the tile COUNT first, then the size, so e.g.
    # B=600 becomes 2x304 instead of being padded up to 1024.
    n_tiles = max(1, -(-B // max_batch_tile))
    # Give v7x's second TensorCore work when one tile would cover the batch
    # (costs only one extra ~0.35us grid step on 1-TC v5e/v6e).
    if n_tiles == 1 and B >= 64:
        n_tiles = 2
    TB = _round_up(-(-B // n_tiles), 16)   # multiple of 16: bf16 sublane packing
    Bp = _round_up(B, TB)
    return TB, Bp


def make_bpnn_forward(w1, b1, w2, b2, *, max_batch_tile=512):
    """One-time parameter prep; returns a jitted fused forward fn.

    w1: (in_features, hidden)   (already transposed vs. PyTorch's (out, in))
    b1: (hidden,)
    w2: (hidden, out_features)
    b2: (out_features,)
    forward(x: (B, in_features) f32) -> (B, out_features) f32
    """
    K, H = w1.shape
    H2, N = w2.shape
    assert H2 == H
    f32, bf16 = jnp.float32, jnp.bfloat16

    # Only the output-feature axis is padded (lane-dense stores). K/H stay at
    # their true extents; zero padding keeps the math identical.
    Np = _round_up(N, 128)

    # Hoisted, one-time weight prep (single pass, final dtypes).
    w1p = w1.astype(bf16)                                               # (K, H)
    b1p = jnp.reshape(b1, (1, H)).astype(f32)                           # (1, H)
    w2p = jnp.pad(w2.astype(bf16), ((0, 0), (0, Np - N)))               # (H, Np)
    b2p = jnp.pad(jnp.reshape(b2, (1, N)).astype(f32),
                  ((0, 0), (0, Np - N)))                                # (1, Np)
    w1p, b1p, w2p, b2p = jax.device_put((w1p, b1p, w2p, b2p))

    vmem_ceiling = _vmem_ceiling_bytes()

    @jax.jit
    def forward(x):
        B, Kx = x.shape
        assert Kx == K
        TB, Bp = _pick_batch_tile(B, max_batch_tile)

        # Per-call work on x only: pad once, directly in bf16 (no f32 temp).
        xp = jnp.pad(x.astype(bf16), ((0, Bp - B), (0, 0)))

        # VMEM budget: x/out tiles double-buffered by the pipeline; count the
        # resident weights twice as well in case constant-index blocks still
        # get two buffers.
        needed = (
            2 * TB * K * 2                      # x tiles (bf16)
            + 2 * TB * Np * 4                   # out tiles (f32)
            + 2 * (K * H + H * Np) * 2          # resident weights (bf16)
            + 2 * (H + Np) * 4                  # biases (f32)
            + TB * max(H, Np) * 4               # in-kernel activation (f32)
        )
        vmem_limit = int(min(max(2 * needed, 8 * 1024 * 1024), vmem_ceiling))

        cost = pl.CostEstimate(
            flops=2 * B * (K * H + H * N),
            transcendentals=0,
            bytes_accessed=(xp.size * 2 + w1p.size * 2 + w2p.size * 2
                            + b1p.size * 4 + b2p.size * 4 + Bp * Np * 4),
        )

        out_padded = pl.pallas_call(
            bpnn_kernel,
            out_shape=jax.ShapeDtypeStruct((Bp, Np), f32),
            grid=(Bp // TB,),
            in_specs=[
                pl.BlockSpec((TB, K), lambda i: (i, 0)),   # x tile (pipelined)
                pl.BlockSpec((K, H), lambda i: (0, 0)),    # W1 resident
                pl.BlockSpec((1, H), lambda i: (0, 0)),    # b1 resident
                pl.BlockSpec((H, Np), lambda i: (0, 0)),   # W2 resident
                pl.BlockSpec((1, Np), lambda i: (0, 0)),   # b2 resident
            ],
            out_specs=pl.BlockSpec((TB, Np), lambda i: (i, 0)),
            compiler_params=pltpu.CompilerParams(
                dimension_semantics=("parallel",),         # shard batch tiles
                vmem_limit_bytes=vmem_limit,
            ),
            cost_estimate=cost,
        )(xp, w1p, b1p, w2p, b2p)

        # TODO(synk): if hidden/out ever reach multi-MiB weights, add a K
        # reduction grid axis ("arbitrary", last) with a VMEM f32 accumulator
        # and move to 256-multiple feature tiles on v6e/v7x.
        return out_padded[:B, :N]

    return forward


def init_params(key, in_features, hidden, out_features):
    """Deterministic init mimicking PyTorch nn.Linear default (uniform +-1/sqrt(fan_in))."""
    k1, k2, k3, k4 = jax.random.split(key, 4)
    bound1 = 1.0 / math.sqrt(in_features)
    bound2 = 1.0 / math.sqrt(hidden)
    # stored already transposed: (in, out)
    w1 = jax.random.uniform(k1, (in_features, hidden), jnp.float32, -bound1, bound1)
    b1 = jax.random.uniform(k2, (hidden,), jnp.float32, -bound1, bound1)
    w2 = jax.random.uniform(k3, (hidden, out_features), jnp.float32, -bound2, bound2)
    b2 = jax.random.uniform(k4, (out_features,), jnp.float32, -bound2, bound2)
    return w1, b1, w2, b2


def _bf16_reference(x, w1, b1, w2, b2):
    """Same math as the kernel (bf16 operands, f32 accumulation) in plain JAX."""
    f32, bf16 = jnp.float32, jnp.bfloat16
    xq = x.astype(bf16).astype(f32)
    w1q = w1.astype(bf16).astype(f32)
    w2q = w2.astype(bf16).astype(f32)
    h = jnp.maximum(xq @ w1q + b1.reshape(1, -1), 0.0)
    hq = h.astype(bf16).astype(f32)
    return hq @ w2q + b2.reshape(1, -1)


if __name__ == "__main__":
    # Module hyperparameters implied by the PyTorch forward:
    # nn.Linear(input_size*seq_len, hidden_sizes[0]) -> ReLU ->
    # nn.Linear(hidden_sizes[-1], output_size)  (single hidden layer here).
    input_size = 4
    seq_len = 8
    hidden_sizes = [32]
    output_size = 8
    batch = 2

    in_features = input_size * seq_len  # 32

    key = jax.random.PRNGKey(0)
    kx, kp, kx2, kx3 = jax.random.split(key, 4)
    x = jax.random.normal(kx, (batch, in_features), jnp.float32)
    w1, b1, w2, b2 = init_params(kp, in_features, hidden_sizes[0], output_size)

    # One-time prep (padding + bf16 casts hoisted out of the per-call path).
    forward = make_bpnn_forward(w1, b1, w2, b2)

    out = forward(x)
    jax.block_until_ready(out)
    assert out.shape == (batch, output_size)

    # Check against a bf16-aware reference (tight) and pure f32 math (loose).
    # NOTE: bf16 operands are a deliberate speed/precision tradeoff vs. the
    # f32 PyTorch reference (f32-parity would need the slower f32 MXU path).
    ref_bf16 = _bf16_reference(x, w1, b1, w2, b2)
    ref_f32 = jnp.maximum(x @ w1 + b1.reshape(1, -1), 0.0) @ w2 + b2.reshape(1, -1)
    assert jnp.allclose(out, ref_bf16, atol=1e-3, rtol=1e-3)
    assert jnp.allclose(out, ref_f32, atol=5e-2, rtol=5e-2)

    # Larger batches: multi-tile grid with resident weights, plus the
    # balanced-tile path (600 -> 2 x 304 rather than padding up to 1024).
    for nb, kk in ((1024, kx2), (600, kx3)):
        xb = jax.random.normal(kk, (nb, in_features), jnp.float32)
        ob = forward(xb)
        jax.block_until_ready(ob)
        assert ob.shape == (nb, output_size)
        assert jnp.allclose(ob, _bf16_reference(xb, w1, b1, w2, b2),
                            atol=1e-3, rtol=1e-3)

    print("KERNEL_OK")
</pallas_src>

<mosaic_0001>
module attributes {stable_mosaic.version = 11 : i64} {
  func.func @bpnn_kernel(%arg0: i32, %arg1: memref<16x32xbf16, #tpu.memory_space<vmem>>, %arg2: memref<32x32xbf16, #tpu.memory_space<vmem>>, %arg3: memref<1x32xf32, #tpu.memory_space<vmem>>, %arg4: memref<32x128xbf16, #tpu.memory_space<vmem>>, %arg5: memref<1x128xf32, #tpu.memory_space<vmem>>, %arg6: memref<16x128xf32, #tpu.memory_space<vmem>>) attributes {dimension_semantics = [#tpu.dimension_semantics<parallel>], iteration_bounds = array<i64: 1>, scalar_prefetch = 0 : i64, scratch_operands = 0 : i64, tpu.core_type = #tpu.core_type<tc>, window_params = [{transform_indices = @transform_0, window_bounds = array<i64: 16, 32>}, {pipeline_mode = #tpu.pipeline_mode<synchronous>, transform_indices = @transform_1, window_bounds = array<i64: 32, 32>}, {pipeline_mode = #tpu.pipeline_mode<synchronous>, transform_indices = @transform_2, window_bounds = array<i64: 1, 32>}, {pipeline_mode = #tpu.pipeline_mode<synchronous>, transform_indices = @transform_3, window_bounds = array<i64: 32, 128>}, {pipeline_mode = #tpu.pipeline_mode<synchronous>, transform_indices = @transform_4, window_bounds = array<i64: 1, 128>}, {transform_indices = @transform_5, window_bounds = array<i64: 16, 128>}]} {
    %c0 = arith.constant 0 : index
    %c0_0 = arith.constant 0 : index
    %0 = vector.load %arg1[%c0, %c0_0] : memref<16x32xbf16, #tpu.memory_space<vmem>>, vector<16x32xbf16>
    %c0_1 = arith.constant 0 : index
    %c0_2 = arith.constant 0 : index
    %1 = vector.load %arg2[%c0_1, %c0_2] : memref<32x32xbf16, #tpu.memory_space<vmem>>, vector<32x32xbf16>
    %cst = arith.constant dense<0.000000e+00> : vector<16x32xf32>
    %2 = tpu.matmul %0, %1, %cst {dimension_numbers = #tpu.dot_dimension_numbers<[1], [0], [0], [1], [0, 0, 1, 1], [], []>} : vector<16x32xbf16>, vector<32x32xbf16>, vector<16x32xf32> -> vector<16x32xf32>
    %c0_3 = arith.constant 0 : index
    %c0_4 = arith.constant 0 : index
    %3 = vector.load %arg3[%c0_3, %c0_4] : memref<1x32xf32, #tpu.memory_space<vmem>>, vector<1x32xf32>
    %4 = vector.broadcast %3 : vector<1x32xf32> to vector<16x32xf32>
    %5 = arith.addf %2, %4 : vector<16x32xf32>
    %cst_5 = arith.constant 0.000000e+00 : f32
    %6 = vector.broadcast %cst_5 : f32 to vector<16x32xf32>
    %7 = arith.maximumf %5, %6 : vector<16x32xf32>
    %8 = arith.truncf %7 : vector<16x32xf32> to vector<16x32xbf16>
    %c0_6 = arith.constant 0 : index
    %c0_7 = arith.constant 0 : index
    %9 = vector.load %arg4[%c0_6, %c0_7] : memref<32x128xbf16, #tpu.memory_space<vmem>>, vector<32x128xbf16>
    %cst_8 = arith.constant dense<0.000000e+00> : vector<16x128xf32>
    %10 = tpu.matmul %8, %9, %cst_8 {dimension_numbers = #tpu.dot_dimension_numbers<[1], [0], [0], [1], [0, 0, 1, 1], [], []>} : vector<16x32xbf16>, vector<32x128xbf16>, vector<16x128xf32> -> vector<16x128xf32>
    %c0_9 = arith.constant 0 : index
    %c0_10 = arith.constant 0 : index
    %11 = vector.load %arg5[%c0_9, %c0_10] : memref<1x128xf32, #tpu.memory_space<vmem>>, vector<1x128xf32>
    %12 = vector.broadcast %11 : vector<1x128xf32> to vector<16x128xf32>
    %13 = arith.addf %10, %12 : vector<16x128xf32>
    %c0_11 = arith.constant 0 : index
    %c0_12 = arith.constant 0 : index
    %14 = vector.load %arg6[%c0_11, %c0_12] : memref<16x128xf32, #tpu.memory_space<vmem>>, vector<16x128xf32>
    tpu.vector_store %arg6[%c0_11, %c0_12], %13 {strides = array<i32>} : memref<16x128xf32, #tpu.memory_space<vmem>>, vector<16x128xf32>,
    return
  }
  func.func @transform_0(%arg0: i32) -> (i32, i32) {
    %c0_i32 = arith.constant 0 : i32
    %c0_i32_0 = arith.constant 0 : i32
    return %arg0, %c0_i32 : i32, i32
  }
  func.func @transform_1(%arg0: i32) -> (i32, i32) {
    %c0_i32 = arith.constant 0 : i32
    %c0_i32_0 = arith.constant 0 : i32
    %c0_i32_1 = arith.constant 0 : i32
    return %c0_i32, %c0_i32_0 : i32, i32
  }
  func.func @transform_2(%arg0: i32) -> (i32, i32) {
    %c0_i32 = arith.constant 0 : i32
    %c0_i32_0 = arith.constant 0 : i32
    %c0_i32_1 = arith.constant 0 : i32
    return %c0_i32, %c0_i32_0 : i32, i32
  }
  func.func @transform_3(%arg0: i32) -> (i32, i32) {
    %c0_i32 = arith.constant 0 : i32
    %c0_i32_0 = arith.constant 0 : i32
    %c0_i32_1 = arith.constant 0 : i32
    return %c0_i32, %c0_i32_0 : i32, i32
  }
  func.func @transform_4(%arg0: i32) -> (i32, i32) {
    %c0_i32 = arith.constant 0 : i32
    %c0_i32_0 = arith.constant 0 : i32
    %c0_i32_1 = arith.constant 0 : i32
    return %c0_i32, %c0_i32_0 : i32, i32
  }
  func.func @transform_5(%arg0: i32) -> (i32, i32) {
    %c0_i32 = arith.constant 0 : i32
    %c0_i32_0 = arith.constant 0 : i32
    return %arg0, %c0_i32 : i32, i32
  }
}

</mosaic_0001>

<bundles_post_ra>
// kernel: forward.1
= control target key start
LH: loop header
LB: loop body
LE: loop exit
PB: predicated region body
PF: predicated region fallthrough
CT: control target
= control target key end

     0   :  { %10 = vsyncpa [#allocation3], 0  ;;  %s367_s0 = inlined_call_operand.vmem [shape: bf16[16,32], index: 0, kind: input, shape index: {}]   ;;  %s368_s1 = inlined_call_operand.vmem [shape: bf16[32,32], index: 1, kind: input, shape index: {}]   ;;  %s369_s2 = inlined_call_operand.hbm [shape: f32[1,32], index: 2, kind: input, shape index: {}]   ;;  %s370_s3 = inlined_call_operand.vmem [shape: bf16[32,128], index: 3, kind: input, shape index: {}]   ;;  %s371_s4 = inlined_call_operand.hbm [shape: f32[1,128], index: 4, kind: input, shape index: {}]   ;;  %s372_s5 = inlined_call_operand.vmem [shape: f32[16,128], index: 5, kind: output, shape index: {}]  }
   0x1   :  { %11 = vsyncpa [#allocation5], 0  ;;  %s286_s18 = smov [#allocation2]   ;;  %s287_s20 = smov [#allocation4]  }
   0x2   :  { %s22_s19 = sshll.u32 %s286_s18, 4  ;;  %s34_s21 = sshll.u32 %s287_s20, 4  ;;  %s23_s19 = int_to_ptr.vmem [resolvable:$true] %s22_s19  ;;  %s35_s21 = int_to_ptr.vmem [resolvable:$true] %s34_s21 }
   0x3   :  { %s238_s24 = scalar_lea.hbm %s369_s2, 16 }
   0x4   :  { %p239_p0 = scmp.ne.s32.totalorder %s369_s2, %s238_s24  ;;  %p242_p1 = scmp.lt.u32.totalorder %s238_s24, %s369_s2 }
   0x6   :  { %p244_p2 = pnand %p242_p1, %p239_p0 }
   0x8   :  { %247 = shalt.err (!%p244_p2)
}
   0x9   :  { %s248_s29 = scalar_lea.vmem %s23_s19, 16  ;;  %s252_s30 = scalar_lea.vmem %s23_s19, 32 }
   0xa   :  { %p249_p3 = scmp.ne.s32.totalorder %s23_s19, %s248_s29  ;;  %p253_p4 = scmp.lt.s32.totalorder %s23_s19, %s23_s19 }
   0xb   :  { %p254_p5 = scmp.lt.s32.totalorder %s252_s30, %s248_s29 }
   0xd   :  { %p255_p6 = por %p254_p5, %p253_p4 }
   0xf   :  { %p256_p7 = pnand %p255_p6, %p249_p3 }
  0x11   :  { %259 = shalt.err (!%p256_p7)
}
  0x12   :  { %25 = dma.hbm_to_vmem [thread:$0]  %s369_s2, 16, %s23_s19, [#allocation3]  }
  0x13   :  { %s260_s10 = scalar_lea.hbm %s371_s4, 16 }
  0x14   :  { %p261_p8 = scmp.ne.s32.totalorder %s371_s4, %s260_s10  ;;  %p264_p9 = scmp.lt.u32.totalorder %s260_s10, %s371_s4 }
  0x16   :  { %p266_p10 = pnand %p264_p9, %p261_p8 }
  0x18   :  { %269 = shalt.err (!%p266_p10)
}
  0x19   :  { %s270_s15 = scalar_lea.vmem %s35_s21, 16  ;;  %s274_s16 = scalar_lea.vmem %s35_s21, 32 }
  0x1a   :  { %p271_p11 = scmp.ne.s32.totalorder %s35_s21, %s270_s15  ;;  %p275_p12 = scmp.lt.s32.totalorder %s35_s21, %s35_s21 }
  0x1b   :  { %p276_p13 = scmp.lt.s32.totalorder %s274_s16, %s270_s15 }
  0x1d   :  { %p277_p0 = por %p276_p13, %p275_p12 }
  0x1f   :  { %p278_p1 = pnand %p277_p0, %p271_p11 }
  0x21   :  { %281 = shalt.err (!%p278_p1)
}
  0x22   :  { %37 = dma.hbm_to_vmem [thread:$0]  %s371_s4, 16, %s35_s21, [#allocation5]  }
  0x23   :  { %282 = dma.done.wait [#allocation3], 16  }
  0x24   :  { %283 = vsyncadd [#allocation3], 4294967280 }
  0x25   :  { %284 = dma.done.wait [#allocation5], 16  }
  0x26   :  { %285 = vsyncadd [#allocation5], 4294967280  ;;  %v288_v0 = vmov 0.0   ;;  %vm289_vm0 = vmmov 0   ;;  %v233_v1 = vld [vmem:[%s368_s1] sm:$0xff]   ;;  %v234_v2 = vld [vmem:[%s368_s1 + $0x8] sm:$0xff]  }
  0x27   :  { %213 = vmatprep.subr.bf16.mxu0 %v288_v0  ;;  %217 = vmatprep.mubr.msk.bf16.mxu0 %vm289_vm0, %v288_v0  ;;  %v235_v3 = vld [vmem:[%s367_s0] sm:$0xff]   ;;  %vm75_vm1 = vcmask 261120   ;;  %v237_v5 = vld [vmem:[%s370_s3 + $0x8] sm:$0xff]  }
  0x28   :  { %221 = vmatprep.subr.bf16.mxu1 %v288_v0  ;;  %225 = vmatprep.mubr.msk.bf16.mxu1 %vm289_vm0, %v288_v0  ;;  %v236_v4 = vld [vmem:[%s370_s3] sm:$0xff]  }
  0x29   :  { %214 = vmatpush3.bf16.msra.mxu0 %v233_v1  ;;  %222 = vmatpush3.bf16.msra.mxu1 %v236_v4  ;;  %v198_v6 = vld [vmem:[#allocation2] ss:$0 sm:$0xff]  ;;  %v203_v16 = vld [vmem:[#allocation4] ss:$0 sm:$0xff] }
  0x2a   :  { %215 = vmatprep.subr.bf16.mxu0 %v288_v0  ;;  %223 = vmatprep.subr.bf16.mxu1 %v288_v0 }
  0x2d   :  { %216 = vmatpush3.bf16.msra.mxu0 %v234_v2  ;;  %224 = vmatpush3.bf16.msra.mxu1 %v237_v5 }
  0x30   :  { %218 = vmatmul.mubr.msk.bf16.vlgmr.msra.gmra.mrb[0].mxu0 %vm75_vm1, %v235_v3 }
 0x103   :  { %v113_v7 = vpop.f32.mrb[0].mxu0 }
 0x104   :  { %v114_v8 = vadd.f32 %v198_v6, %v113_v7  ;;  %v219_v9 = vpop.f32.mrb[1].mxu0 }
 0x105   :  { %v116_v10 = vpop.f32.mrb[2].mxu0 }
 0x106   :  { %v117_v11 = vadd.f32 %v198_v6, %v116_v10  ;;  %v220_v12 = vpop.f32.mrb[3].mxu0  ;;  %v120_v13 = vmax.f32 %v114_v8, 0.0 }
 0x108   :  { %v121_v14 = vmax.f32 %v117_v11, 0.0 }
 0x10a   :  { %v122_v15 = vpack.c.bf16 %v121_v14, %v120_v13 }
 0x10c   :  { %226 = vmatmul.mubr.msk.bf16.vlgmr.msra.gmra.mrb[0].mxu1 %vm75_vm1, %v122_v15 }
 0x1df   :  { %v183_v17 = vpop.f32.mrb[0].mxu1 }
 0x1e0   :  { %v184_v18 = vadd.f32 %v203_v16, %v183_v17  ;;  %v227_v19 = vpop.f32.mrb[1].mxu1 }
 0x1e1   :  { %v186_v20 = vpop.f32.mrb[2].mxu1 }
 0x1e2   :  { %190 = vst [vmem:[%s372_s5] sm:$0xff] %v184_v18  ;;  %v187_v21 = vadd.f32 %v203_v16, %v186_v20  ;;  %v228_v22 = vpop.f32.mrb[3].mxu1 }
 0x1e4   :  { %191 = vst [vmem:[%s372_s5 + $0x8] sm:$0xff] %v187_v21 }
 0x1e5   :  { %196 = vsyncpa [#allocation3], 1 }
 0x1e6   :  { %197 = vsyncpa [#allocation5], 1 }

</bundles_post_ra>
